<compile_context>
chip_gen: v7x
topology: tpu7x:2x2x1
jax: 0.10.0
libtpu: 0.0.40
codegen_flags: <defaults>
</compile_context>

<pallas_src>
import numpy as np

import jax
import jax.numpy as jnp
from jax.experimental import pallas as pl
from jax.experimental.pallas import tpu as pltpu


# ----------------------------------------------------------------------------------
# Kernel
# ----------------------------------------------------------------------------------
def _make_kernel(Bb, L, D, E, groups, eps, shared_q):
    inv_sqrt_d = 1.0 / (D ** 0.5)
    inv_groups = 1.0 / float(len(groups))

    def kernel(x_ref, mask_ref, wproj_ref, bproj_ref, q_ref, bexp_ref, out_ref):
        # ---- fused projections: [key | class_a | class_b | selector] --------------
        # Fold (Bb, L) into M so the shared-weight matmul fills the MXU.
        x2d = x_ref[...].reshape(Bb * L, D)                                   # bf16
        proj = jnp.dot(x2d, wproj_ref[...],
                       preferred_element_type=jnp.float32) + bproj_ref[...]  # (Bb*L,4D) f32
        # slice-then-downcast: bf16 for MXU consumers, f32 for the sigmoid (v5e EUP)
        x_key = proj[:, 0 * D:1 * D].astype(jnp.bfloat16)                     # (Bb*L, D)
        a3 = proj[:, 1 * D:2 * D].astype(jnp.bfloat16).reshape(Bb, L, D)
        b3 = proj[:, 2 * D:3 * D].astype(jnp.bfloat16).reshape(Bb, L, D)
        sel_logits = proj[:, 3 * D:4 * D].reshape(Bb, L, D)                   # f32

        # ---- score matrix, computed ONCE -------------------------------------------
        if shared_q:
            # One folded (Bb*L, D) x (D, E) contraction against the grid-invariant q^T.
            zt = (jnp.dot(x_key, q_ref[...],
                          preferred_element_type=jnp.float32)
                  * inv_sqrt_d).reshape(Bb, L, E)                             # (Bb, L, E)
        else:
            zt = jnp.einsum("bld,bed->ble", x_key.reshape(Bb, L, D), q_ref[...],
                            preferred_element_type=jnp.float32) * inv_sqrt_d
        # Other orientation via a single XLU transpose (no second MXU pass).
        z = jnp.swapaxes(zt, 1, 2)                                            # (Bb, E, L)

        # ---- forward weights (z orientation: lane axis = L, dense VPU work) --------
        maskv = mask_ref[...].astype(jnp.float32)                             # (Bb,1,L) {0,1}
        zp = jnp.maximum(z, 0.0) * maskv      # relu(z) is finite => *mask == masked_fill
        zn = jnp.maximum(-z, 0.0) * maskv
        a_fw = zp * pl.reciprocal(jnp.sum(zp, -1, keepdims=True) + eps, approx=True)
        b_fw = zn * pl.reciprocal(jnp.sum(zn, -1, keepdims=True) + eps, approx=True)

        bias_exp = bexp_ref[...].astype(jnp.float32)     # (E,D) or (Bb,E,D), streamed bf16
        class_a = jnp.einsum("bel,bld->bed", a_fw.astype(jnp.bfloat16), a3,
                             preferred_element_type=jnp.float32) + bias_exp   # (Bb,E,D)
        class_b = jnp.einsum("bel,bld->bed", b_fw.astype(jnp.bfloat16), b3,
                             preferred_element_type=jnp.float32) + bias_exp

        # ---- backward weights: per-group normalization over E ----------------------
        # Group sizes are compile-time constants -> static slices + VPU sums
        # (no tiny G matmuls on the MXU).
        ap = jnp.maximum(zt, 0.0)                                             # (Bb, L, E)
        bp = jnp.maximum(-zt, 0.0)
        a_parts, b_parts, off = [], [], 0
        for n in groups:
            sa = ap[:, :, off:off + n]
            sb = bp[:, :, off:off + n]
            a_parts.append(sa * pl.reciprocal(jnp.sum(sa, -1, keepdims=True) + eps,
                                              approx=True))
            b_parts.append(sb * pl.reciprocal(jnp.sum(sb, -1, keepdims=True) + eps,
                                              approx=True))
            off += n
        a_bw = jnp.concatenate(a_parts, axis=-1).astype(jnp.bfloat16)         # (Bb, L, E)
        b_bw = jnp.concatenate(b_parts, axis=-1).astype(jnp.bfloat16)

        class_a2 = jnp.einsum("ble,bed->bld", a_bw, class_a.astype(jnp.bfloat16),
                              preferred_element_type=jnp.float32) * inv_groups
        class_b2 = jnp.einsum("ble,bed->bld", b_bw, class_b.astype(jnp.bfloat16),
                              preferred_element_type=jnp.float32) * inv_groups

        # ---- selector blend: b + s * (a - b) ---------------------------------------
        selector = jax.nn.sigmoid(sel_logits)                                 # f32
        out_ref[...] = class_b2 + selector * (class_a2 - class_b2)

    return kernel


# ----------------------------------------------------------------------------------
# Block-size / VMEM heuristics
# ----------------------------------------------------------------------------------
def _step_vmem_bytes(bb, L, D, E, shared):
    """Rough per-grid-step VMEM footprint (double-buffered streams + intermediates)."""
    m = bb * L
    stream = m * D * 2 + m * D * 4 + bb * L * 2            # x(bf16) + out(f32) + mask(bf16)
    if not shared:
        stream += 2 * bb * E * D * 2                       # q + bias expansion tiles (bf16)
    stream *= 2                                            # double-buffered
    proj = m * 4 * D * 4 + 3 * m * D * 2                   # f32 proj + bf16 key/a/b copies
    inter = 4 * bb * E * D * 4 + 2 * m * D * 4 + 6 * bb * E * L * 4
    weights = 4 * D * D * 2 + 4 * D * 4 + 2 * E * D * 2    # fused W^T (bf16) + biases + q/bexp
    return stream + proj + inter + 2 * weights


def _pick_batch_block(bs, L, D, E, shared, target_m=256,
                      vmem_budget_bytes=30 * 1024 * 1024):
    """Largest useful batch block: fits the VMEM budget (v7x: 64 MiB chip), reaches a
    folded M = Bb*L >= target_m for v6e/v7x MXU fill when possible, and keeps the grid
    >= 2 steps so the 'parallel' axis can shard across v7x's two TensorCores."""
    divisors = [d for d in range(1, bs + 1) if bs % d == 0]
    fits = [d for d in divisors
            if _step_vmem_bytes(d, L, D, E, shared) <= vmem_budget_bytes] or [1]
    pref = [d for d in fits if bs // d >= 2] or fits          # keep >= 2 grid steps
    filled = [d for d in pref if d * L >= target_m]           # smallest block that fills MXU
    return filled[0] if filled else pref[-1]


# ----------------------------------------------------------------------------------
# Wrapper
# ----------------------------------------------------------------------------------
def prepare_static_expansion(params):
    """One-time glue hoisted out of the hot path: fuse the four d_model x d_model
    projections into one (D, 4D) weight / (1, 4D) bias and pre-cast tables to bf16."""
    w_fused = jnp.concatenate(
        [params["Wk"].T, params["Wa"].T, params["Wb"].T, params["Ws"].T],
        axis=1).astype(jnp.bfloat16)                                  # (D, 4D)
    b_fused = jnp.concatenate(
        [params["bk"], params["ba"], params["bb"], params["bsel"]],
        axis=1).astype(jnp.float32)                                   # (1, 4D)
    return {
        "w_fused": w_fused,
        "b_fused": b_fused,
        "emb_q": params["emb_q"].astype(jnp.bfloat16),                # (n_exp, D)
        "emb_b": params["emb_b"].astype(jnp.bfloat16),                # (n_exp, D)
    }


def static_expansion_pallas(x, n_indexes, mask, prepared, num_enc_exp_list,
                            eps=1e-9, batch_block=None, shared_indexes=None,
                            vmem_limit_bytes=40 * 1024 * 1024):
    bs, L, D = x.shape
    groups = tuple(int(n) for n in num_enc_exp_list)
    E = int(sum(groups))

    # Statically decide whether every batch row uses the same expansion indexes
    # (the usual static-expansion case).  No exception-swallowing fallback.
    if shared_indexes is None:
        tracer_t = getattr(jax.core, "Tracer", type(None))
        if isinstance(n_indexes, tracer_t):
            shared_indexes = False                 # cannot inspect values under trace
        else:
            ni = np.asarray(n_indexes)
            shared_indexes = bool((ni == ni[:1]).all()) if ni.ndim == 2 else True

    Bb = batch_block or _pick_batch_block(
        bs, L, D, E, shared_indexes,
        vmem_budget_bytes=int(0.75 * vmem_limit_bytes))
    assert bs % Bb == 0, "batch block must divide batch size"

    x_bf = x.astype(jnp.bfloat16)
    # {0,1} multiplicative mask streamed as bf16; exact masked_fill semantics because
    # the masked values (relu outputs) are always finite.
    maskf = (mask != 0).reshape(bs, 1, L).astype(jnp.bfloat16)

    w_fused, b_fused = prepared["w_fused"], prepared["b_fused"]

    def batched(s1, s2):
        # NOTE: add pipeline_mode=pl.Buffered(3) here if xprof shows exposed DMA.
        return pl.BlockSpec((Bb, s1, s2), lambda b: (b, 0, 0))

    def const2d(arr):
        # Grid-invariant operand: constant block index => fetched once, never re-DMA'd.
        return pl.BlockSpec(arr.shape, lambda b: (0, 0))

    if shared_indexes:
        idx0 = n_indexes[0] if getattr(n_indexes, "ndim", 1) == 2 else n_indexes
        q_op = prepared["emb_q"][idx0].T          # (D, E) bf16, grid-invariant
        b_op = prepared["emb_b"][idx0]            # (E, D) bf16, grid-invariant
        q_spec, b_spec = const2d(q_op), const2d(b_op)
    else:
        q_op = prepared["emb_q"][n_indexes]       # (bs, E, D) bf16, streamed per block
        b_op = prepared["emb_b"][n_indexes]       # (bs, E, D) bf16, streamed per block
        q_spec, b_spec = batched(E, D), batched(E, D)

    kernel = _make_kernel(Bb, L, D, E, groups, float(eps), shared_indexes)

    call = pl.pallas_call(
        kernel,
        out_shape=jax.ShapeDtypeStruct((bs, L, D), jnp.float32),
        grid=(bs // Bb,),
        in_specs=[batched(L, D),        # x (bf16)
                  batched(1, L),        # {0,1} mask (bf16)
                  const2d(w_fused),     # fused [Wk|Wa|Wb|Ws]^T (D, 4D) bf16
                  const2d(b_fused),     # fused biases (1, 4D) f32
                  q_spec,               # query expansion vectors
                  b_spec],              # bias expansion vectors
        out_specs=pl.BlockSpec((Bb, L, D), lambda b: (b, 0, 0)),
        compiler_params=pltpu.CompilerParams(
            dimension_semantics=("parallel",),    # batch blocks are independent
            vmem_limit_bytes=vmem_limit_bytes),
    )
    # TODO(synk): for D not a multiple of 128 the proj slices / output store are
    # lane-masked (correct but slower); pad D in the wrapper if this becomes hot.
    return call(x_bf, maskf, w_fused, b_fused, q_op, b_op)


# ----------------------------------------------------------------------------------
# Pure-JAX f32 reference mirroring the PyTorch forward (dropout = identity)
# ----------------------------------------------------------------------------------
def static_expansion_ref(x, n_indexes, mask, p, num_enc_exp_list, eps=1e-9):
    d = x.shape[-1]
    q = p["emb_q"][n_indexes]
    bexp = p["emb_b"][n_indexes]
    xk = x @ p["Wk"].T + p["bk"]
    z = jnp.einsum("bed,bld->bel", q, xk) / d ** 0.5
    m = (mask != 0)
    a_fw = jnp.where(m, jax.nn.relu(z), 0.0)
    b_fw = jnp.where(m, jax.nn.relu(-z), 0.0)
    a_fw = a_fw / (a_fw.sum(-1, keepdims=True) + eps)
    b_fw = b_fw / (b_fw.sum(-1, keepdims=True) + eps)
    class_a = jnp.einsum("bel,bld->bed", a_fw, x @ p["Wa"].T + p["ba"]) + bexp
    class_b = jnp.einsum("bel,bld->bed", b_fw, x @ p["Wb"].T + p["bb"]) + bexp
    zt = jnp.swapaxes(z, -1, -2)
    a_bw, b_bw = jax.nn.relu(zt), jax.nn.relu(-zt)
    accum, al, bl = 0, [], []
    for n in num_enc_exp_list:
        sa = a_bw[:, :, accum:accum + n]
        sb = b_bw[:, :, accum:accum + n]
        al.append(sa / (sa.sum(-1, keepdims=True) + eps))
        bl.append(sb / (sb.sum(-1, keepdims=True) + eps))
        accum += n
    a_bw = jnp.concatenate(al, -1)
    b_bw = jnp.concatenate(bl, -1)
    class_a = jnp.einsum("ble,bed->bld", a_bw, class_a) / len(num_enc_exp_list)
    class_b = jnp.einsum("ble,bed->bld", b_bw, class_b) / len(num_enc_exp_list)
    selector = jax.nn.sigmoid(x @ p["Ws"].T + p["bsel"])
    return selector * class_a + (1.0 - selector) * class_b


if __name__ == "__main__":
    # Small deterministic config.  D = 128 keeps all slices / stores lane-dense.
    bs, L, D = 4, 16, 128
    num_enc_exp_list = [2, 4]
    E = sum(num_enc_exp_list)

    key = jax.random.PRNGKey(0)
    ks = jax.random.split(key, 16)

    def nrm(k, shape, scale=0.1):
        return (scale * jax.random.normal(k, shape)).astype(jnp.float32)

    params = {
        "emb_q": nrm(ks[0], (E, D)),
        "emb_b": nrm(ks[1], (E, D)),
        "Wk": nrm(ks[2], (D, D)), "bk": nrm(ks[3], (1, D)),
        "Wa": nrm(ks[4], (D, D)), "ba": nrm(ks[5], (1, D)),
        "Wb": nrm(ks[6], (D, D)), "bb": nrm(ks[7], (1, D)),
        "Ws": nrm(ks[8], (D, D)), "bsel": nrm(ks[9], (1, D)),
    }
    x = nrm(ks[10], (bs, L, D), scale=1.0)
    n_indexes = jnp.tile(jnp.arange(E, dtype=jnp.int32), (bs, 1))     # (bs, E)
    mask = (jax.random.uniform(ks[11], (bs, 1, L)) > 0.2).astype(jnp.float32)

    prepared = prepare_static_expansion(params)
    ref = static_expansion_ref(x, n_indexes, mask, params, num_enc_exp_list)

    # Shared-index fast path (auto-detected: every row of n_indexes is identical).
    out = jax.block_until_ready(
        static_expansion_pallas(x, n_indexes, mask, prepared, num_enc_exp_list))
    assert out.shape == (bs, L, D)
    err = float(jnp.max(jnp.abs(out - ref)))
    # bf16 MXU inputs + approximate EUP reciprocals vs. an f32 reference.
    assert jnp.allclose(out, ref, atol=2e-2, rtol=2e-2), f"shared path max err {err}"

    # General per-batch-index path.
    out2 = jax.block_until_ready(
        static_expansion_pallas(x, n_indexes, mask, prepared, num_enc_exp_list,
                                shared_indexes=False))
    err2 = float(jnp.max(jnp.abs(out2 - ref)))
    assert jnp.allclose(out2, ref, atol=2e-2, rtol=2e-2), f"general path max err {err2}"

    print("KERNEL_OK")
</pallas_src>

<mosaic_0001>
module attributes {stable_mosaic.version = 11 : i64} {
  func.func @kernel(%arg0: i32, %arg1: memref<2x16x128xbf16, #tpu.memory_space<vmem>>, %arg2: memref<2x1x16xbf16, #tpu.memory_space<vmem>>, %arg3: memref<128x512xbf16, #tpu.memory_space<vmem>>, %arg4: memref<1x512xf32, #tpu.memory_space<vmem>>, %arg5: memref<128x6xbf16, #tpu.memory_space<vmem>>, %arg6: memref<6x128xbf16, #tpu.memory_space<vmem>>, %arg7: memref<2x16x128xf32, #tpu.memory_space<vmem>>) attributes {dimension_semantics = [#tpu.dimension_semantics<parallel>], iteration_bounds = array<i64: 2>, scalar_prefetch = 0 : i64, scratch_operands = 0 : i64, tpu.core_type = #tpu.core_type<tc>, window_params = [{transform_indices = @transform_0, window_bounds = array<i64: 2, 16, 128>}, {transform_indices = @transform_1, window_bounds = array<i64: 2, 1, 16>}, {pipeline_mode = #tpu.pipeline_mode<synchronous>, transform_indices = @transform_2, window_bounds = array<i64: 128, 512>}, {pipeline_mode = #tpu.pipeline_mode<synchronous>, transform_indices = @transform_3, window_bounds = array<i64: 1, 512>}, {pipeline_mode = #tpu.pipeline_mode<synchronous>, transform_indices = @transform_4, window_bounds = array<i64: 128, 6>}, {pipeline_mode = #tpu.pipeline_mode<synchronous>, transform_indices = @transform_5, window_bounds = array<i64: 6, 128>}, {transform_indices = @transform_6, window_bounds = array<i64: 2, 16, 128>}]} {
    %c0 = arith.constant 0 : index
    %c0_0 = arith.constant 0 : index
    %c0_1 = arith.constant 0 : index
    %0 = vector.load %arg1[%c0, %c0_0, %c0_1] : memref<2x16x128xbf16, #tpu.memory_space<vmem>>, vector<2x16x128xbf16>
    %1 = vector.shape_cast %0 : vector<2x16x128xbf16> to vector<32x128xbf16>
    %c0_2 = arith.constant 0 : index
    %c0_3 = arith.constant 0 : index
    %2 = vector.load %arg3[%c0_2, %c0_3] : memref<128x512xbf16, #tpu.memory_space<vmem>>, vector<128x512xbf16>
    %cst = arith.constant dense<0.000000e+00> : vector<32x512xf32>
    %3 = tpu.matmul %1, %2, %cst {dimension_numbers = #tpu.dot_dimension_numbers<[1], [0], [0], [1], [0, 0, 1, 1], [], []>} : vector<32x128xbf16>, vector<128x512xbf16>, vector<32x512xf32> -> vector<32x512xf32>
    %c0_4 = arith.constant 0 : index
    %c0_5 = arith.constant 0 : index
    %4 = vector.load %arg4[%c0_4, %c0_5] : memref<1x512xf32, #tpu.memory_space<vmem>>, vector<1x512xf32>
    %5 = vector.broadcast %4 : vector<1x512xf32> to vector<32x512xf32>
    %6 = arith.addf %3, %5 : vector<32x512xf32>
    %7 = vector.extract_strided_slice %6 {offsets = [0, 0], sizes = [32, 128], strides = [1, 1]} : vector<32x512xf32> to vector<32x128xf32>
    %8 = arith.truncf %7 : vector<32x128xf32> to vector<32x128xbf16>
    %9 = vector.extract_strided_slice %6 {offsets = [0, 128], sizes = [32, 128], strides = [1, 1]} : vector<32x512xf32> to vector<32x128xf32>
    %10 = arith.truncf %9 : vector<32x128xf32> to vector<32x128xbf16>
    %11 = vector.shape_cast %10 : vector<32x128xbf16> to vector<2x16x128xbf16>
    %12 = vector.extract_strided_slice %6 {offsets = [0, 256], sizes = [32, 128], strides = [1, 1]} : vector<32x512xf32> to vector<32x128xf32>
    %13 = arith.truncf %12 : vector<32x128xf32> to vector<32x128xbf16>
    %14 = vector.shape_cast %13 : vector<32x128xbf16> to vector<2x16x128xbf16>
    %15 = vector.extract_strided_slice %6 {offsets = [0, 384], sizes = [32, 128], strides = [1, 1]} : vector<32x512xf32> to vector<32x128xf32>
    %16 = vector.shape_cast %15 : vector<32x128xf32> to vector<2x16x128xf32>
    %c0_6 = arith.constant 0 : index
    %c0_7 = arith.constant 0 : index
    %17 = vector.load %arg5[%c0_6, %c0_7] : memref<128x6xbf16, #tpu.memory_space<vmem>>, vector<128x6xbf16>
    %cst_8 = arith.constant dense<0.000000e+00> : vector<32x6xf32>
    %18 = tpu.matmul %8, %17, %cst_8 {dimension_numbers = #tpu.dot_dimension_numbers<[1], [0], [0], [1], [0, 0, 1, 1], [], []>} : vector<32x128xbf16>, vector<128x6xbf16>, vector<32x6xf32> -> vector<32x6xf32>
    %cst_9 = arith.constant 0.0883883461 : f32
    %19 = vector.broadcast %cst_9 : f32 to vector<32x6xf32>
    %20 = arith.mulf %18, %19 : vector<32x6xf32>
    %21 = vector.shape_cast %20 : vector<32x6xf32> to vector<2x16x6xf32>
    %22 = tpu.transpose %21, [0, 2, 1] : vector<2x16x6xf32> -> vector<2x6x16xf32>
    %c0_10 = arith.constant 0 : index
    %c0_11 = arith.constant 0 : index
    %c0_12 = arith.constant 0 : index
    %23 = vector.load %arg2[%c0_10, %c0_11, %c0_12] : memref<2x1x16xbf16, #tpu.memory_space<vmem>>, vector<2x1x16xbf16>
    %24 = arith.extf %23 : vector<2x1x16xbf16> to vector<2x1x16xf32>
    %cst_13 = arith.constant 0.000000e+00 : f32
    %25 = vector.broadcast %cst_13 : f32 to vector<2x6x16xf32>
    %26 = arith.maximumf %22, %25 : vector<2x6x16xf32>
    %27 = vector.broadcast %24 : vector<2x1x16xf32> to vector<2x6x16xf32>
    %28 = arith.mulf %26, %27 : vector<2x6x16xf32>
    %cst_14 = arith.constant 0.000000e+00 : f32
    %29 = vector.broadcast %cst_14 : f32 to vector<2x6x16xf32>
    %30 = arith.subf %29, %22 : vector<2x6x16xf32>
    %cst_15 = arith.constant 0.000000e+00 : f32
    %31 = vector.broadcast %cst_15 : f32 to vector<2x6x16xf32>
    %32 = arith.maximumf %30, %31 : vector<2x6x16xf32>
    %33 = vector.broadcast %24 : vector<2x1x16xf32> to vector<2x6x16xf32>
    %34 = arith.mulf %32, %33 : vector<2x6x16xf32>
    %cst_16 = arith.constant dense<0.000000e+00> : vector<2x6xf32>
    %35 = vector.multi_reduction <add>, %28, %cst_16 [2] : vector<2x6x16xf32> to vector<2x6xf32>
    %36 = vector.shape_cast %35 : vector<2x6xf32> to vector<2x6x1xf32>
    %cst_17 = arith.constant 9.99999971E-10 : f32
    %37 = vector.broadcast %cst_17 : f32 to vector<2x6x1xf32>
    %38 = arith.addf %36, %37 : vector<2x6x1xf32>
    %39 = tpu.reciprocal %38 {approx = true} : vector<2x6x1xf32> -> vector<2x6x1xf32>
    %40 = vector.broadcast %39 : vector<2x6x1xf32> to vector<2x6x16xf32>
    %41 = arith.mulf %28, %40 : vector<2x6x16xf32>
    %cst_18 = arith.constant dense<0.000000e+00> : vector<2x6xf32>
    %42 = vector.multi_reduction <add>, %34, %cst_18 [2] : vector<2x6x16xf32> to vector<2x6xf32>
    %43 = vector.shape_cast %42 : vector<2x6xf32> to vector<2x6x1xf32>
    %cst_19 = arith.constant 9.99999971E-10 : f32
    %44 = vector.broadcast %cst_19 : f32 to vector<2x6x1xf32>
    %45 = arith.addf %43, %44 : vector<2x6x1xf32>
    %46 = tpu.reciprocal %45 {approx = true} : vector<2x6x1xf32> -> vector<2x6x1xf32>
    %47 = vector.broadcast %46 : vector<2x6x1xf32> to vector<2x6x16xf32>
    %48 = arith.mulf %34, %47 : vector<2x6x16xf32>
    %c0_20 = arith.constant 0 : index
    %c0_21 = arith.constant 0 : index
    %49 = vector.load %arg6[%c0_20, %c0_21] : memref<6x128xbf16, #tpu.memory_space<vmem>>, vector<6x128xbf16>
    %50 = arith.extf %49 : vector<6x128xbf16> to vector<6x128xf32>
    %51 = arith.truncf %41 : vector<2x6x16xf32> to vector<2x6x16xbf16>
    "tpu.trace_start"() <{level = 10 : i32, message = "bel,bld->bed"}> : () -> ()
    %cst_22 = arith.constant dense<0.000000e+00> : vector<2x6x128xf32>
    %52 = tpu.matmul %51, %11, %cst_22 {dimension_numbers = #tpu.dot_dimension_numbers<[2], [1], [1], [2], [0, 0, 0, 1, 1, 2], [0], [0]>} : vector<2x6x16xbf16>, vector<2x16x128xbf16>, vector<2x6x128xf32> -> vector<2x6x128xf32>
    "tpu.trace_stop"() : () -> ()
    %53 = vector.shape_cast %50 : vector<6x128xf32> to vector<1x6x128xf32>
    %54 = vector.broadcast %53 : vector<1x6x128xf32> to vector<2x6x128xf32>
    %55 = arith.addf %52, %54 : vector<2x6x128xf32>
    %56 = arith.truncf %48 : vector<2x6x16xf32> to vector<2x6x16xbf16>
    "tpu.trace_start"() <{level = 10 : i32, message = "bel,bld->bed"}> : () -> ()
    %cst_23 = arith.constant dense<0.000000e+00> : vector<2x6x128xf32>
    %57 = tpu.matmul %56, %14, %cst_23 {dimension_numbers = #tpu.dot_dimension_numbers<[2], [1], [1], [2], [0, 0, 0, 1, 1, 2], [0], [0]>} : vector<2x6x16xbf16>, vector<2x16x128xbf16>, vector<2x6x128xf32> -> vector<2x6x128xf32>
    "tpu.trace_stop"() : () -> ()
    %58 = vector.shape_cast %50 : vector<6x128xf32> to vector<1x6x128xf32>
    %59 = vector.broadcast %58 : vector<1x6x128xf32> to vector<2x6x128xf32>
    %60 = arith.addf %57, %59 : vector<2x6x128xf32>
    %cst_24 = arith.constant 0.000000e+00 : f32
    %61 = vector.broadcast %cst_24 : f32 to vector<2x16x6xf32>
    %62 = arith.maximumf %21, %61 : vector<2x16x6xf32>
    %cst_25 = arith.constant 0.000000e+00 : f32
    %63 = vector.broadcast %cst_25 : f32 to vector<2x16x6xf32>
    %64 = arith.subf %63, %21 : vector<2x16x6xf32>
    %cst_26 = arith.constant 0.000000e+00 : f32
    %65 = vector.broadcast %cst_26 : f32 to vector<2x16x6xf32>
    %66 = arith.maximumf %64, %65 : vector<2x16x6xf32>
    %67 = vector.extract_strided_slice %62 {offsets = [0, 0, 0], sizes = [2, 16, 2], strides = [1, 1, 1]} : vector<2x16x6xf32> to vector<2x16x2xf32>
    %68 = vector.extract_strided_slice %66 {offsets = [0, 0, 0], sizes = [2, 16, 2], strides = [1, 1, 1]} : vector<2x16x6xf32> to vector<2x16x2xf32>
    %cst_27 = arith.constant dense<0.000000e+00> : vector<2x16xf32>
    %69 = vector.multi_reduction <add>, %67, %cst_27 [2] : vector<2x16x2xf32> to vector<2x16xf32>
    %70 = vector.shape_cast %69 : vector<2x16xf32> to vector<2x16x1xf32>
    %cst_28 = arith.constant 9.99999971E-10 : f32
    %71 = vector.broadcast %cst_28 : f32 to vector<2x16x1xf32>
    %72 = arith.addf %70, %71 : vector<2x16x1xf32>
    %73 = tpu.reciprocal %72 {approx = true} : vector<2x16x1xf32> -> vector<2x16x1xf32>
    %74 = vector.broadcast %73 : vector<2x16x1xf32> to vector<2x16x2xf32>
    %75 = arith.mulf %67, %74 : vector<2x16x2xf32>
    %cst_29 = arith.constant dense<0.000000e+00> : vector<2x16xf32>
    %76 = vector.multi_reduction <add>, %68, %cst_29 [2] : vector<2x16x2xf32> to vector<2x16xf32>
    %77 = vector.shape_cast %76 : vector<2x16xf32> to vector<2x16x1xf32>
    %cst_30 = arith.constant 9.99999971E-10 : f32
    %78 = vector.broadcast %cst_30 : f32 to vector<2x16x1xf32>
    %79 = arith.addf %77, %78 : vector<2x16x1xf32>
    %80 = tpu.reciprocal %79 {approx = true} : vector<2x16x1xf32> -> vector<2x16x1xf32>
    %81 = vector.broadcast %80 : vector<2x16x1xf32> to vector<2x16x2xf32>
    %82 = arith.mulf %68, %81 : vector<2x16x2xf32>
    %83 = vector.extract_strided_slice %62 {offsets = [0, 0, 2], sizes = [2, 16, 4], strides = [1, 1, 1]} : vector<2x16x6xf32> to vector<2x16x4xf32>
    %84 = vector.extract_strided_slice %66 {offsets = [0, 0, 2], sizes = [2, 16, 4], strides = [1, 1, 1]} : vector<2x16x6xf32> to vector<2x16x4xf32>
    %cst_31 = arith.constant dense<0.000000e+00> : vector<2x16xf32>
    %85 = vector.multi_reduction <add>, %83, %cst_31 [2] : vector<2x16x4xf32> to vector<2x16xf32>
    %86 = vector.shape_cast %85 : vector<2x16xf32> to vector<2x16x1xf32>
    %cst_32 = arith.constant 9.99999971E-10 : f32
    %87 = vector.broadcast %cst_32 : f32 to vector<2x16x1xf32>
    %88 = arith.addf %86, %87 : vector<2x16x1xf32>
    %89 = tpu.reciprocal %88 {approx = true} : vector<2x16x1xf32> -> vector<2x16x1xf32>
    %90 = vector.broadcast %89 : vector<2x16x1xf32> to vector<2x16x4xf32>
    %91 = arith.mulf %83, %90 : vector<2x16x4xf32>
    %cst_33 = arith.constant dense<0.000000e+00> : vector<2x16xf32>
    %92 = vector.multi_reduction <add>, %84, %cst_33 [2] : vector<2x16x4xf32> to vector<2x16xf32>
    %93 = vector.shape_cast %92 : vector<2x16xf32> to vector<2x16x1xf32>
    %cst_34 = arith.constant 9.99999971E-10 : f32
    %94 = vector.broadcast %cst_34 : f32 to vector<2x16x1xf32>
    %95 = arith.addf %93, %94 : vector<2x16x1xf32>
    %96 = tpu.reciprocal %95 {approx = true} : vector<2x16x1xf32> -> vector<2x16x1xf32>
    %97 = vector.broadcast %96 : vector<2x16x1xf32> to vector<2x16x4xf32>
    %98 = arith.mulf %84, %97 : vector<2x16x4xf32>
    %99 = tpu.concatenate %75, %91 in 2 : vector<2x16x2xf32>, vector<2x16x4xf32> -> vector<2x16x6xf32>
    %100 = arith.truncf %99 : vector<2x16x6xf32> to vector<2x16x6xbf16>
    %101 = tpu.concatenate %82, %98 in 2 : vector<2x16x2xf32>, vector<2x16x4xf32> -> vector<2x16x6xf32>
    %102 = arith.truncf %101 : vector<2x16x6xf32> to vector<2x16x6xbf16>
    %103 = arith.truncf %55 : vector<2x6x128xf32> to vector<2x6x128xbf16>
    "tpu.trace_start"() <{level = 10 : i32, message = "ble,bed->bld"}> : () -> ()
    %cst_35 = arith.constant dense<0.000000e+00> : vector<2x16x128xf32>
    %104 = tpu.matmul %100, %103, %cst_35 {dimension_numbers = #tpu.dot_dimension_numbers<[2], [1], [1], [2], [0, 0, 0, 1, 1, 2], [0], [0]>} : vector<2x16x6xbf16>, vector<2x6x128xbf16>, vector<2x16x128xf32> -> vector<2x16x128xf32>
    "tpu.trace_stop"() : () -> ()
    %cst_36 = arith.constant 5.000000e-01 : f32
    %105 = vector.broadcast %cst_36 : f32 to vector<2x16x128xf32>
    %106 = arith.mulf %104, %105 : vector<2x16x128xf32>
    %107 = arith.truncf %60 : vector<2x6x128xf32> to vector<2x6x128xbf16>
    "tpu.trace_start"() <{level = 10 : i32, message = "ble,bed->bld"}> : () -> ()
    %cst_37 = arith.constant dense<0.000000e+00> : vector<2x16x128xf32>
    %108 = tpu.matmul %102, %107, %cst_37 {dimension_numbers = #tpu.dot_dimension_numbers<[2], [1], [1], [2], [0, 0, 0, 1, 1, 2], [0], [0]>} : vector<2x16x6xbf16>, vector<2x6x128xbf16>, vector<2x16x128xf32> -> vector<2x16x128xf32>
    "tpu.trace_stop"() : () -> ()
    %cst_38 = arith.constant 5.000000e-01 : f32
    %109 = vector.broadcast %cst_38 : f32 to vector<2x16x128xf32>
    %110 = arith.mulf %108, %109 : vector<2x16x128xf32>
    %111 = arith.negf %16 : vector<2x16x128xf32>
    %112 = math.exp %111 : vector<2x16x128xf32>
    %cst_39 = arith.constant 1.000000e+00 : f32
    %113 = vector.broadcast %cst_39 : f32 to vector<2x16x128xf32>
    %114 = arith.addf %113, %112 : vector<2x16x128xf32>
    %115 = arith.divf %113, %114 : vector<2x16x128xf32>
    %116 = arith.subf %106, %110 : vector<2x16x128xf32>
    %117 = arith.mulf %115, %116 : vector<2x16x128xf32>
    %118 = arith.addf %110, %117 : vector<2x16x128xf32>
    %c0_40 = arith.constant 0 : index
    %c0_41 = arith.constant 0 : index
    %c0_42 = arith.constant 0 : index
    %119 = vector.load %arg7[%c0_40, %c0_41, %c0_42] : memref<2x16x128xf32, #tpu.memory_space<vmem>>, vector<2x16x128xf32>
    tpu.vector_store %arg7[%c0_40, %c0_41, %c0_42], %118 {strides = array<i32>} : memref<2x16x128xf32, #tpu.memory_space<vmem>>, vector<2x16x128xf32>,
    return
  }
  func.func @transform_0(%arg0: i32) -> (i32, i32, i32) {
    %c0_i32 = arith.constant 0 : i32
    %c0_i32_0 = arith.constant 0 : i32
    %c0_i32_1 = arith.constant 0 : i32
    return %arg0, %c0_i32, %c0_i32_0 : i32, i32, i32
  }
  func.func @transform_1(%arg0: i32) -> (i32, i32, i32) {
    %c0_i32 = arith.constant 0 : i32
    %c0_i32_0 = arith.constant 0 : i32
    %c0_i32_1 = arith.constant 0 : i32
    return %arg0, %c0_i32, %c0_i32_0 : i32, i32, i32
  }
  func.func @transform_2(%arg0: i32) -> (i32, i32) {
    %c0_i32 = arith.constant 0 : i32
    %c0_i32_0 = arith.constant 0 : i32
    %c0_i32_1 = arith.constant 0 : i32
    return %c0_i32, %c0_i32_0 : i32, i32
  }
  func.func @transform_3(%arg0: i32) -> (i32, i32) {
    %c0_i32 = arith.constant 0 : i32
    %c0_i32_0 = arith.constant 0 : i32
    %c0_i32_1 = arith.constant 0 : i32
    return %c0_i32, %c0_i32_0 : i32, i32
  }
  func.func @transform_4(%arg0: i32) -> (i32, i32) {
    %c0_i32 = arith.constant 0 : i32
    %c0_i32_0 = arith.constant 0 : i32
    %c0_i32_1 = arith.constant 0 : i32
    return %c0_i32, %c0_i32_0 : i32, i32
  }
  func.func @transform_5(%arg0: i32) -> (i32, i32) {
    %c0_i32 = arith.constant 0 : i32
    %c0_i32_0 = arith.constant 0 : i32
    %c0_i32_1 = arith.constant 0 : i32
    return %c0_i32, %c0_i32_0 : i32, i32
  }
  func.func @transform_6(%arg0: i32) -> (i32, i32, i32) {
    %c0_i32 = arith.constant 0 : i32
    %c0_i32_0 = arith.constant 0 : i32
    %c0_i32_1 = arith.constant 0 : i32
    return %arg0, %c0_i32, %c0_i32_0 : i32, i32, i32
  }
}

</mosaic_0001>

<bundles_post_ra>
// kernel: tpu_custom_call.1
= control target key start
LH: loop header
LB: loop body
LE: loop exit
PB: predicated region body
PF: predicated region fallthrough
CT: control target
= control target key end

     0   :  { %11 = vsyncpa [#allocation3], 0  ;;  %s2386_s0 = inlined_call_operand.vmem [shape: bf16[4,16,128], index: 0, kind: input, shape index: {}]   ;;  %s2387_s1 = inlined_call_operand.vmem [shape: bf16[4,1,16], index: 1, kind: input, shape index: {}]   ;;  %s2388_s2 = inlined_call_operand.hbm [shape: bf16[128,512], index: 2, kind: input, shape index: {}]   ;;  %s2389_s3 = inlined_call_operand.vmem [shape: f32[1,512], index: 3, kind: input, shape index: {}]   ;;  %s2390_s4 = inlined_call_operand.vmem [shape: bf16[128,6], index: 4, kind: input, shape index: {}]   ;;  %s2391_s5 = inlined_call_operand.vmem [shape: bf16[6,128], index: 5, kind: input, shape index: {}]   ;;  %s2392_s6 = inlined_call_operand.hbm [shape: f32[4,16,128], index: 6, kind: output, shape index: {}]  }
   0x1   :  { %12 = vsyncpa [#allocation4], 0 }
   0x2   :  { %14 = vsyncpa [#allocation4 + $0x1], 0  ;;  %s2015_s21 = smov 0   ;;  %s2017_s22 = smov 0  }
   0x3   :  { %s2019_s23 = smov 0   ;;  %s2021_s24 = smov 0  }
   0x4 LB: > { %s2036_s25 = sadd.s32 4294967295, %s1968_s24   ;;  %s1534_s26 = sadd.s32 4294967294, %s1968_s24   ;;  %s1968_s24 = sphi %s2021_s24, %s2408_s24   ;;  %s1964_s23 = sphi %s2019_s23, %s2407_s23   ;;  %s1960_s22 = sphi %s2017_s22, %s2406_s22   ;;  %s1956_s21 = sphi %s2015_s21, %s2405_s21  }
   0x5   : > { %s2040_s27 = sadd.s32 1, %s1968_s24   ;;  %s163_s28 = sadd.s32 1, %s1964_s23 }
   0x6   : > { %s160_s29 = ssub.s32 %s1968_s24, %s2040_s27  ;;  %p173_p0 = scmp.ne.s32.totalorder %s1964_s23, %s1960_s22 }
   0x7   : > { %p161_p1 = scmp.eq.s32.totalorder %s160_s29, 0  ;;  %p174_p2 = scmp.eq.s32.totalorder %s2036_s25, 1 }
   0x8   : > { %p179_p3 = scmp.ne.s32.totalorder %s1960_s22, %s1956_s21  ;;  %p180_p4 = scmp.eq.s32.totalorder %s1534_s26, 1 }
   0x9   : > { %s2051_s30 = scalar_select %p161_p1, %s1964_s23, %s163_s28  }
   0xa   : > { %p2053_p5 = por %p174_p2, %p173_p0  ;;  %p2057_p6 = por %p180_p4, %p179_p3 }
   0xb   : > { %p1535_p7 = scmp.ge.s32.totalorder %s1968_s24, 1  ;;  %p187_p8 = scmp.lt.s32.totalorder %s1968_s24, 3 }
   0xc   : > { %s2396_s7 = scalar_select %p2053_p5, 1, 0 }
   0xd   : > { %s2397_s8 = scalar_select %p2057_p6, 1, 0 }
   0xe   : > { %p2393_p9 = scmp.eq.s32.totalorder %s2036_s25, 0  ;;  %p2064_p10 = pnand %p1535_p7, %p187_p8 }
   0xf   : > { %s1970_s10 = smov [#allocation2]   ;;  %s1874_s15 = scalar_lea.hbm %s2388_s2, 4096 }
  0x10   : > { %s2398_s9 = scalar_select %p2064_p10, 1, 0 }
  0x11   : > { %s199_s11 = sshll.u32 %s1970_s10, 4  ;;  %p1708_p11 = pneg %p2064_p10  ;;  %s200_s11 = int_to_ptr.vmem [resolvable:$true] %s199_s11 }
  0x12   : > { %p1875_p13 = scmp.ne.s32.totalorder %s2388_s2, %s1874_s15  ;;  %p1881_p3 = scmp.lt.u32.totalorder %s1874_s15, %s2388_s2 }
  0x13   : > { %p2072_p12 = pnand %p2393_p9, %p1708_p11 }
  0x15   : > { %p1876_p0 = pneg %p2072_p12 }
  0x17   : > { %p1877_p1 = pnand %p1876_p0, %p1875_p13 }
  0x19   : > { %p1878_p2 = pneg %p1877_p1 }
  0x1b   : > { %p1883_p4 = pnand %p1881_p3, %p1878_p2 }
  0x1d   : > { %1886 = shalt.err (!%p1883_p4)
}
  0x1e   : > { %s1887_s20 = scalar_lea.vmem %s200_s11, 4096  ;;  %p1895_p9 = scmp.lt.s32.totalorder %s200_s11, %s200_s11 }
  0x1f   : > { %p1888_p7 = scmp.ne.s32.totalorder %s200_s11, %s1887_s20  ;;  %p1896_p6 = scmp.lt.s32.totalorder %s1887_s20, %s1887_s20 }
  0x21   : > { %p1890_p8 = pnand %p1888_p7, %p1876_p0  ;;  %p1897_p5 = por %p1896_p6, %p1895_p9 }
  0x23   : > { %p1891_p11 = pneg %p1890_p8 }
  0x25   : > { %p1898_p10 = pnand %p1897_p5, %p1891_p11 }
  0x27   : > { %1901 = shalt.err (!%p1898_p10)
}
  0x28   : > { %s1971_s26 = smov 256   ;;  %s1972_s28 = smov 16  }
  0x29   : > { %1711 = dma.hbm_to_vmem [thread:$0]  (!%p2072_p12), %s2388_s2, 4096, %s200_s11, [#allocation3], %s1971_s26, %s1971_s26, %s1972_s28  }
  0x2a   : > { %p2400_p13 = scmp.ne.s32.totalorder %s2398_s9, 0 }
  0x2b   : > { %p2401_p1 = scmp.eq.s32.totalorder (!%p2400_p13), %s2036_s25, 0 }
  0x2c   : > { %242 = sbr.rel (%p2400_p13) target bundleno = 1293 (0x50d), region = 44 }
  0x33   : > { %1947 = dma.done.wait (%p2401_p1), [#allocation3], 4096   ;;  %p2402_p0 = pmov %p2401_p1 }
  0x34   : > { %v1973_v0 = vmov 0   ;;  %s1541_s12 = sshll.u32 %s2036_s25, 1  ;;  %v1760_v1 = vld [vmem:[#allocation2 + $0x4] ss:$16 sps:$4 sm:$0xff]   ;;  %v1762_v2 = vld [vmem:[#allocation2] ss:$16 sps:$4 sm:$0xff]   ;;  %v329_v44 = vlaneseq }
  0x35   : > { %1949 = vsyncadd (%p2402_p0), [#allocation3], 4294963200  ;;  %553 = vmatprep.mubr.bf16.mxu0 %v1973_v0  ;;  %606 = vmatprep.mubr.bf16.mxu1 %v1973_v0  ;;  %p278_p5 = scmp.lt.s32.totalorder %s1541_s12, 3  ;;  %v1763_v3 = vld [vmem:[#allocation2 + $0x24] ss:$16 sps:$4 sm:$0xff]   ;;  %v1798_v30 = vld [vmem:[%s2390_s4 + $0x8] sm:$0xff]  }
  0x36   : > { %521 = vmatprep.subr.bf16.mxu0 %v1760_v1  ;;  %v1765_v4 = vld [vmem:[#allocation2 + $0x20] ss:$16 sps:$4 sm:$0xff]   ;;  %v1766_v5 = vld [vmem:[#allocation2 + $0x44] ss:$16 sps:$4 sm:$0xff]   ;;  %v1786_v11 = vld [vmem:[#allocation2 + $0xc] ss:$16 sps:$4 sm:$0xff]  }
  0x37   : > { %s2410_s12 = smov (!%p278_p5, %s1541_s12), 3  ;;  %522 = vmatpush1.bf16.msra.mxu0 %v1762_v2  ;;  %v1768_v6 = vld [vmem:[#allocation2 + $0x40] ss:$16 sps:$4 sm:$0xff]   ;;  %v1769_v7 = vld [vmem:[#allocation2 + $0x64] ss:$16 sps:$4 sm:$0xff]   ;;  %574 = vmatprep.subr.bf16.mxu1 %v1786_v11  ;;  %v1806_v35 = vld [vmem:[%s2390_s4 + $0x18] sm:$0xff]  }
  0x38   : > { %523 = vmatprep.subr.bf16.mxu0 %v1763_v3  ;;  %s1605_s9 = sshll.u32 %s2410_s12, 3  ;;  %v1771_v8 = vld [vmem:[#allocation2 + $0x60] ss:$16 sps:$4 sm:$0xff]   ;;  %v1772_v9 = vld [vmem:[#allocation2 + $0x84] ss:$16 sps:$4 sm:$0xff]   ;;  %v1814_v39 = vld [vmem:[%s2390_s4 + $0x28] sm:$0xff]   ;;  %s287_s26 = scalar_lea.vmem %s2387_s1, %s2410_s12 }
  0x39   : > { %s2107_s14 = scalar_lea.vmem %s2386_s0, %s1605_s9  ;;  %v1774_v10 = vld [vmem:[#allocation2 + $0x80] ss:$16 sps:$4 sm:$0xff]   ;;  %v1788_v12 = vld [vmem:[#allocation2 + $0x8] ss:$16 sps:$4 sm:$0xff]   ;;  %v1789_v13 = vld [vmem:[#allocation2 + $0x2c] ss:$16 sps:$4 sm:$0xff]  }
  0x3a   : > { %v1775_v14 = vld [vmem:[#allocation2 + $0xa4] ss:$16 sps:$4 sm:$0xff]   ;;  %575 = vmatpush1.bf16.msra.mxu1 %v1788_v12  ;;  %v1791_v15 = vld [vmem:[#allocation2 + $0x28] ss:$16 sps:$4 sm:$0xff]   ;;  %v1792_v16 = vld [vmem:[#allocation2 + $0x4c] ss:$16 sps:$4 sm:$0xff]  }
  0x3b   : > { %524 = vmatpush1.bf16.msra.mxu0 %v1765_v4  ;;  %576 = vmatprep.subr.bf16.mxu1 %v1789_v13  ;;  %v1777_v17 = vld [vmem:[#allocation2 + $0xa0] ss:$16 sps:$4 sm:$0xff]   ;;  %v1778_v18 = vld [vmem:[#allocation2 + $0xc4] ss:$16 sps:$4 sm:$0xff]   ;;  %v1795_v19 = vld [vmem:[#allocation2 + $0x48] ss:$16 sps:$4 sm:$0xff]  }
  0x3c   : > { %525 = vmatprep.subr.bf16.mxu0 %v1766_v5  ;;  %v1796_v20 = vld [vmem:[#allocation2 + $0x6c] ss:$16 sps:$4 sm:$0xff]   ;;  %v1780_v21 = vld [vmem:[#allocation2 + $0xc0] ss:$16 sps:$4 sm:$0xff]   ;;  %v1781_v22 = vld [vmem:[#allocation2 + $0xe4] ss:$16 sps:$4 sm:$0xff]  }
  0x3d   : > { %v1799_v23 = vld [vmem:[#allocation2 + $0x68] ss:$16 sps:$4 sm:$0xff]   ;;  %v1783_v24 = vld [vmem:[#allocation2 + $0xe0] ss:$16 sps:$4 sm:$0xff]   ;;  %v1800_v25 = vld [vmem:[#allocation2 + $0x8c] ss:$16 sps:$4 sm:$0xff]  }
  0x3e   : > { %577 = vmatpush1.bf16.msra.mxu1 %v1791_v15  ;;  %v1794_v26 = vld [vmem:[%s2390_s4] sm:$0xff]   ;;  %v1803_v27 = vld [vmem:[#allocation2 + $0x88] ss:$16 sps:$4 sm:$0xff]   ;;  %v1804_v28 = vld [vmem:[#allocation2 + $0xac] ss:$16 sps:$4 sm:$0xff]   ;;  %v1974_v42 = vmov 0.0  }
  0x3f   : > { %526 = vmatpush1.bf16.msra.mxu0 %v1768_v6  ;;  %578 = vmatprep.subr.bf16.mxu1 %v1792_v16  ;;  %v1784_v29 = vld [vmem:[%s2107_s14] sm:$0xff]   ;;  %v1807_v31 = vld [vmem:[#allocation2 + $0xa8] ss:$16 sps:$4 sm:$0xff]   ;;  %v1808_v32 = vld [vmem:[#allocation2 + $0xcc] ss:$16 sps:$4 sm:$0xff]   ;;  %v2139_v45 = vshrl.u32 %v329_v44, 7 }
  0x40   : > { %527 = vmatprep.subr.bf16.mxu0 %v1769_v7  ;;  %v1802_v33 = vld [vmem:[%s2390_s4 + $0x10] sm:$0xff]   ;;  %v1785_v34 = vld [vmem:[%s2107_s14 + $0x8] sm:$0xff]   ;;  %v1810_v36 = vld [vmem:[%s2390_s4 + $0x20] sm:$0xff]   ;;  %vm836_vm0 = vcmask 128000   ;;  %s1975_s12 = smov 126   ;;  %vm1976_vm1 = vmmov 0  }
  0x41   : > { %v1811_v37 = vld [vmem:[#allocation2 + $0xc8] ss:$16 sps:$4 sm:$0xff]   ;;  %v1812_v38 = vld [vmem:[#allocation2 + $0xec] ss:$16 sps:$4 sm:$0xff]   ;;  %v1816_v41 = vld [vmem:[%s2390_s4 + $0x30] sm:$0xff]   ;;  %v331_v46 = vsub.s32 0, %v2139_v45 }
  0x42   : > { %579 = vmatpush1.bf16.msra.mxu1 %v1795_v19  ;;  %v1815_v40 = vld [vmem:[#allocation2 + $0xe8] ss:$16 sps:$4 sm:$0xff]   ;;  %v2145_v47 = vld [vmem:[%s2389_s3] sm:$0xf]  ;;  %v335_v48 = vsub.s32 1, %v2139_v45  ;;  %vm1052_vm2 = vcmask 15360  }
  0x43   : > { %528 = vmatpush1.bf16.msra.mxu0 %v1771_v8  ;;  %580 = vmatprep.subr.bf16.mxu1 %v1796_v20  ;;  %v1817_v43 = vld [vmem:[%s2390_s4 + $0x38] sm:$0xff]   ;;  %v332_v49 = vrot.slane %v2145_v47, %v331_v46  ;;  %v815_v15 = vld [vmem:[%s287_s26 + $0x1] sm:$0x1]  ;;  %v814_v16 = vld [vmem:[%s287_s26] sm:$0x1]  ;;  %vm1117_vm3 = vcmask 31744  }
  0x44   : > { %529 = vmatprep.subr.bf16.mxu0 %v1772_v9  ;;  %v336_v51 = vrot.slane %v2145_v47, %v335_v48  ;;  %v339_v48 = vsub.s32 2, %v2139_v45  ;;  %vm865_vm4 = vcmask 130048   ;;  %vm1200_vm5 = vcmask 1042432   ;;  %s274_s10 = sand.u32 1, %s1960_s22   ;;  %s1607_s14 = sshll.u32 %s2036_s25, 9 }
  0x45   : > { %vm1196_vm6 = vcmask 48128   ;;  %s1540_s9 = sshll.u32 %s274_s10, 5  ;;  %s2341_s17 = scalar_lea.hbm %s2392_s6, %s1607_s14 }
  0x46   : > { %581 = vmatpush1.bf16.msra.mxu1 %v1799_v23  ;;  %s276_s11 = scalar_lea.vmem [#allocation5], %s1540_s9  ;;  %s2345_s25 = scalar_lea.sflag [#allocation4], %s274_s10 }
  0x47   : > { %530 = vmatpush1.bf16.msra.mxu0 %v1774_v10  ;;  %582 = vmatprep.subr.bf16.mxu1 %v1800_v25  ;;  %s1451_s13 = sshll.u32 %s276_s11, 4  ;;  %p2403_p9 = scmp.ne.s32.totalorder %s2396_s7, 0  ;;  %s2336_s13 = int_to_ptr.vmem [resolvable:$true] %s1451_s13 }
  0x48   : > { %531 = vmatprep.subr.bf16.mxu0 %v1775_v14  ;;  %s1902_s18 = scalar_lea.vmem %s2336_s13, 512  ;;  %s1977_s19 = smov [#allocation5]  }
  0x49   : > { %p1903_p6 = scmp.ne.s32.totalorder %s2336_s13, %s1902_s18  ;;  %s1906_s20 = sshll.u32 %s1977_s19, 4  ;;  %s1907_s20 = int_to_ptr.vmem [resolvable:$false] %s1906_s20 }
  0x4a   : > { %583 = vmatpush1.bf16.msra.mxu1 %v1803_v27  ;;  %s1908_s26 = scalar_lea.vmem %s1907_s20, 1024  ;;  %p1909_p2 = scmp.lt.s32.totalorder %s2336_s13, %s1907_s20 }
  0x4b   : > { %532 = vmatpush1.bf16.msra.mxu0 %v1777_v17  ;;  %584 = vmatprep.subr.bf16.mxu1 %v1804_v28  ;;  %v817_v17 = vunpack.c.l.bf16 %v815_v15  ;;  %p1904_p10 = pnand %p1903_p6, %p2403_p9  ;;  %p1910_p3 = scmp.lt.s32.totalorder %s1908_s26, %s1902_s18 }
  0x4c   : > { %533 = vmatprep.subr.bf16.mxu0 %v1778_v18  ;;  %v816_v18 = vunpack.c.l.bf16 %v814_v16 }
  0x4d   : > { %v827_v19 = vrot.slane %v817_v17, %v331_v46  ;;  %p1905_p12 = pneg %p1904_p10  ;;  %p1911_p4 = por %p1910_p3, %p1909_p2 }
  0x4e   : > { %585 = vmatpush1.bf16.msra.mxu1 %v1807_v31 }
  0x4f   : > { %534 = vmatpush1.bf16.msra.mxu0 %v1780_v21  ;;  %586 = vmatprep.subr.bf16.mxu1 %v1808_v32  ;;  %v823_v21 = vrot.slane %v816_v18, %v331_v46  ;;  %p1912_p7 = pnand %p1911_p4, %p1905_p12 }
  0x50   : > { %535 = vmatprep.subr.bf16.mxu0 %v1781_v22 }
  0x52   : > { %587 = vmatpush1.bf16.msra.mxu1 %v1811_v37 }
  0x53   : > { %536 = vmatpush1.bf16.msra.mxu0 %v1783_v24  ;;  %588 = vmatprep.subr.bf16.mxu1 %v1812_v38 }
  0x54   : > { %1634 = vmatprep.subr.bf16.mxu0 %v1794_v26 }
  0x56   : > { %554 = vmatmul.mubr.bf16.vlgmr.msra.gmra.mrb[0].mxu0 %v1784_v29  ;;  %589 = vmatpush1.bf16.msra.mxu1 %v1815_v40 }
  0x57   : > { %563 = vmatprep.mubr.bf16.mxu0 %v1973_v0  ;;  %1635 = vmatpush3.bf16.msra.mxu0 %v1794_v26 }
  0x58   : > { %1636 = vmatprep.subr.bf16.mxu0 %v1798_v30  ;;  %1654 = vmatprep.subr.bf16.mxu1 %v1974_v42 }
  0x59   : > { %607 = vmatmul.mubr.bf16.vlgmr.msra.gmra.mrb[0].mxu1 %v1784_v29 }
  0x5a   : > { %616 = vmatprep.mubr.bf16.mxu1 %v1973_v0 }
  0x5b   : > { %1637 = vmatpush3.bf16.msra.mxu0 %v1798_v30 }
  0x5c   : > { %1638 = vmatprep.subr.bf16.mxu0 %v1802_v33 }
  0x5e   : > { %564 = vmatmul.mubr.bf16.gmra.mrb[4].mxu0 %v1785_v34 }
  0x5f   : > { %1639 = vmatpush3.bf16.msra.mxu0 %v1802_v33 }
  0x60   : > { %1640 = vmatprep.subr.bf16.mxu0 %v1806_v35 }
  0x61   : > { %617 = vmatmul.mubr.bf16.gmra.mrb[4].mxu1 %v1785_v34 }
  0x62   : > { %1656 = vmatprep.mubr.msk.bf16.mxu1 %vm1976_vm1, %v1974_v42 }
  0x63   : > { %1641 = vmatpush3.bf16.msra.mxu0 %v1806_v35 }
  0x64   : > { %1642 = vmatprep.subr.bf16.mxu0 %v1810_v36 }
  0x67   : > { %1643 = vmatpush3.bf16.msra.mxu0 %v1810_v36 }
  0x68   : > { %1644 = vmatprep.subr.bf16.mxu0 %v1814_v39 }
  0x6b   : > { %1645 = vmatpush3.bf16.msra.mxu0 %v1814_v39 }
  0x6c   : > { %1646 = vmatprep.subr.bf16.mxu0 %v1816_v41 }
  0x6f   : > { %1647 = vmatpush3.bf16.msra.mxu0 %v1816_v41 }
  0x70   : > { %1648 = vmatprep.subr.bf16.mxu0 %v1817_v43 }
  0x73   : > { %1649 = vmatpush3.bf16.msra.mxu0 %v1817_v43 }
  0x74   : > { %1672 = vmatprep.subr.bf16.mxu0 %v1974_v42 }
 0x129   : > { %v555_v50 = vpop.f32.mrb[0].mxu0 }
 0x12a   : > { %v557_v52 = vpop.f32.mrb[1].mxu0  ;;  %v556_v54 = vadd.f32 %v555_v50, %v332_v49 }
 0x12b   : > { %v559_v53 = vpop.f32.mrb[2].mxu0  ;;  %v558_v57 = vadd.f32 %v557_v52, %v336_v51 }
 0x12c   : > { %v560_v55 = vadd.f32 %v559_v53, %v332_v49  ;;  %v561_v56 = vpop.f32.mrb[3].mxu0  ;;  %v608_v41 = vpop.f32.mrb[0].mxu1  ;;  %v340_v53 = vrot.slane %v2145_v47, %v339_v48 }
 0x12d   : > { %v562_v58 = vadd.f32 %v561_v56, %v336_v51  ;;  %v2191_v46 = vpop.f32.mrb[1].mxu1 }
 0x12e   : > { %v627_v59 = vpack.c.bf16 %v560_v55, %v556_v54 }
 0x12f   : > { %v629_v60 = vpack.c.bf16 %v562_v58, %v558_v57  ;;  %v2208_v58 = vadd.f32 %v608_v41, %v340_v53 }
 0x130   : > { %1650 = vmatprep.mubr.bf16.mxu0 %v627_v59 }
 0x131   : > { %v565_v61 = vpop.f32.mrb[4].mxu0  ;;  %1655 = vmatpush3.bf16.msra.mxu1 %v629_v60 }
 0x132   : > { %v567_v62 = vpop.f32.mrb[5].mxu0  ;;  %1660 = vmatprep.subr.bf16.mxu1 %v1974_v42  ;;  %v566_v1 = vadd.f32 %v565_v61, %v332_v49 }
 0x133   : > { %v2151_v63 = vadd.f32 %v567_v62, %v336_v51  ;;  %v569_v0 = vpop.f32.mrb[6].mxu0 }
 0x134   : > { %v570_v2 = vadd.f32 %v569_v0, %v332_v49  ;;  %v571_v3 = vpop.f32.mrb[7].mxu0  ;;  %v612_v49 = vpop.f32.mrb[2].mxu1 }
 0x135   : > { %v2153_v4 = vadd.f32 %v571_v3, %v336_v51  ;;  %v2198_v52 = vpop.f32.mrb[3].mxu1  ;;  %v2210_v59 = vadd.f32 %v612_v49, %v340_v53 }
 0x136   : > { %v628_v5 = vpack.c.bf16 %v570_v2, %v566_v1  ;;  %v618_v54 = vpop.f32.mrb[4].mxu1 }
 0x137   : > { %v630_v6 = vpack.c.bf16 %v2153_v4, %v2151_v63  ;;  %v2206_v57 = vpop.f32.mrb[5].mxu1  ;;  %v619_v62 = vadd.f32 %v618_v54, %v340_v53  ;;  %v631_v1 = vpack.c.bf16 %v2210_v59, %v2208_v58 }
 0x138   : > { %1651 = vmatmul.mubr.bf16.vlgmr.msra.gmra.mrb[8].mxu0 %v628_v5  ;;  %v622_v60 = vpop.f32.mrb[6].mxu1 }
 0x139   : > { %v623_v0 = vadd.f32 %v622_v60, %v340_v53  ;;  %1674 = vmatprep.mubr.msk.bf16.mxu0 %vm1976_vm1, %v1974_v42  ;;  %v2228_v5 = vpop.f32.mrb[7].mxu1 }
 0x13b   : > { %v632_v3 = vpack.c.bf16 %v623_v0, %v619_v62 }
 0x13d   : > { %1673 = vmatpush3.bf16.msra.mxu0 %v632_v3 }
 0x13e   : > { %1684 = vmatprep.subr.bf16.mxu0 %v1974_v42 }
 0x20b   : > { %v1652_v7 = vpop.f32.mrb[8].mxu0 }
 0x20c   : > { %v2157_v8 = vmul.f32 0.088388346, %v1652_v7  ;;  %v731_v9 = vpop.f32.mrb[9].mxu0 }
 0x20d   : > { %v746_v10 = vmul.f32 0.088388346, %v731_v9  ;;  %v1653_v11 = vpop.f32.mrb[10].mxu0 }
 0x20e   : > { %782 = vxpose.xlu1.b32.start [1/2] (short) (narrow) %v2157_v8, 8  ;;  %v734_v12 = vpop.f32.mrb[11].mxu0  ;;  %v749_v13 = vmul.f32 0.088388346, %v1653_v11  ;;  %v2187_v43 = vmax.f32 %v2157_v8, 0.0  ;;  %v1046_v55 = vsub.f32 0.0, %v2157_v8 }
 0x20f   : > { %750 = vxpose.xlu0.b32.start [1/2] (short) (narrow) %v746_v10, 8  ;;  %v747_v14 = vmul.f32 0.088388346, %v734_v12  ;;  %v2176_v37 = vmax.f32 %v746_v10, 0.0  ;;  %v1044_v44 = vsub.f32 0.0, %v746_v10 }
 0x210   : > { %v2182_v39 = vmax.f32 %v749_v13, 0.0  ;;  %v1047_v50 = vsub.f32 0.0, %v749_v13  ;;  %v2222_v2 = vmax.f32 %v1046_v55, 0.0  ;;  %v1059_v8 = vsel %vm1052_vm2, %v2187_v43, 0.0 }
 0x211   : > { %v2178_v38 = vmax.f32 %v747_v14, 0.0  ;;  %v1045_v40 = vsub.f32 0.0, %v747_v14  ;;  %v2202_v56 = vmax.f32 %v1044_v44, 0.0  ;;  %v1053_v9 = vsel %vm1052_vm2, %v2176_v37, 0.0 }
 0x212   : > { %783 = vxpose.xlu1.b32.end [2/2] (short) (narrow) %v749_v13, 8  ;;  %v2214_v61 = vmax.f32 %v1047_v50, 0.0  ;;  %v1062_v11 = vsel %vm1052_vm2, %v2182_v39, 0.0  ;;  %v1083_v12 = vsel %vm1052_vm2, %v2222_v2, 0.0 }
 0x213   : > { %751 = vxpose.xlu0.b32.end [2/2] (short) (narrow) %v747_v14, 8  ;;  %v2194_v51 = vmax.f32 %v1045_v40, 0.0  ;;  %v1056_v7 = vsel %vm1052_vm2, %v2178_v38, 0.0  ;;  %v1077_v10 = vsel %vm1052_vm2, %v2202_v56, 0.0 }
 0x214   : > { %v1086_v14 = vsel %vm1052_vm2, %v2214_v61, 0.0 }
 0x215   : > { %v1080_v13 = vsel %vm1052_vm2, %v2194_v51, 0.0 }
 0x28e   : > { %v798_v20 = vpop.trf.xlu1 }
 0x28f   : > { %v819_v22 = vmax.f32 %v798_v20, 0.0  ;;  %v831_v23 = vsub.f32 0.0, %v798_v20  ;;  %v766_v24 = vpop.trf.xlu0 }
 0x290   : > { %v818_v25 = vmax.f32 %v766_v24, 0.0  ;;  %v830_v26 = vsub.f32 0.0, %v766_v24 }
 0x291   : > { %v833_v27 = vmax.f32 %v831_v23, 0.0  ;;  %v2164_v28 = vmul.f32 %v827_v19, %v819_v22 }
 0x292   : > { %v832_v29 = vmax.f32 %v830_v26, 0.0  ;;  %v2166_v30 = vmul.f32 %v823_v21, %v818_v25 }
 0x293   : > { %v840_v31 = vsel %vm836_vm0, %v2164_v28, 0.0  ;;  %v2172_v34 = vmul.f32 %v833_v27, %v827_v19 }
 0x294   : > { %841 = vadd.xlane.f32.xlu1 %v840_v31  ;;  %v837_v32 = vsel %vm836_vm0, %v2166_v30, 0.0  ;;  %v2170_v33 = vmul.f32 %v832_v29, %v823_v21 }
 0x295   : > { %838 = vadd.xlane.f32.xlu0 %v837_v32  ;;  %v852_v36 = vsel %vm836_vm0, %v2172_v34, 0.0 }
 0x296   : > { %v849_v35 = vsel %vm836_vm0, %v2170_v33, 0.0 }
 0x298   : > { %850 = vadd.xlane.f32.xlu1 %v849_v35 }
 0x29c   : > { %853 = vadd.xlane.f32.xlu1 %v852_v36 }
 0x2ab   : > { %1105 = vrot.lane.b32.xlu0 %v2176_v37, %s1975_s12 }
 0x2ad   : > { %1107 = vrot.lane.b32.xlu1 %v2178_v38, %s1975_s12 }
 0x2af   : > { %1111 = vrot.lane.b32.xlu0 %v2182_v39, %s1975_s12 }
 0x2b1   : > { %1109 = vrot.lane.b32.xlu1 %v2187_v43, %s1975_s12 }
 0x2b3   : > { %1148 = vrot.lane.b32.xlu0 %v2194_v51, %s1975_s12 }
 0x2b5   : > { %1146 = vrot.lane.b32.xlu1 %v2202_v56, %s1975_s12 }
 0x2b7   : > { %1152 = vrot.lane.b32.xlu0 %v2214_v61, %s1975_s12 }
 0x2b9   : > { %1150 = vrot.lane.b32.xlu1 %v2222_v2, %s1975_s12 }
 0x2d6   : > { %1057 = vadd.xlane.f32.xlu0 %v1056_v7 }
 0x2da   : > { %1060 = vadd.xlane.f32.xlu0 %v1059_v8 }
 0x2dd   : > { %1054 = vadd.xlane.f32.xlu1 %v1053_v9 }
 0x2de   : > { %1078 = vadd.xlane.f32.xlu0 %v1077_v10 }
 0x2e1   : > { %1063 = vadd.xlane.f32.xlu1 %v1062_v11 }
 0x2e2   : > { %1084 = vadd.xlane.f32.xlu0 %v1083_v12 }
 0x2e5   : > { %1081 = vadd.xlane.f32.xlu1 %v1080_v13 }
 0x2e9   : > { %1087 = vadd.xlane.f32.xlu1 %v1086_v14 }
 0x321   : > { %v842_v15 = vpop.xlane.xlu1 %841 }
 0x322   : > { %v839_v16 = vpop.xlane.xlu0 %838  ;;  %v844_v18 = vadd.f32 1e-09, %v842_v15 }
 0x323   : > { %v843_v17 = vadd.f32 1e-09, %v839_v16 }
 0x325   : > { %1818 = vrcp.f32 %v843_v17  ;;  %v851_v19 = vpop.xlane.xlu1 %850 }
 0x326   : > { %v1106_v20 = vpop.permute.xlu0 %1105  ;;  %1820 = vrcp.f32 %v844_v18  ;;  %v855_v25 = vadd.f32 1e-09, %v851_v19 }
 0x327   : > { %v1118_v53 = vsel %vm1117_vm3, %v1106_v20, 0.0 }
 0x329   : > { %v854_v21 = vpop.xlane.xlu1 %853 }
 0x32a   : > { %v856_v22 = vadd.f32 1e-09, %v854_v21  ;;  %v1112_v23 = vpop.permute.xlu0 %1111 }
 0x32b   : > { %v1127_v24 = vsel %vm1117_vm3, %v1112_v23, 0.0  ;;  %v861_v23 = vld [vmem:[%s2391_s5] sm:$0x7] }
 0x32c   : > { %1822 = vrcp.f32 %v856_v22  ;;  %1128 = vadd.xlane.f32.xlu1 %v1127_v24 }
 0x32d   : > { %v1108_v26 = vpop.permute.xlu1 %1107  ;;  %1824 = vrcp.f32 %v855_v25 }
 0x32e   : > { %v1149_v27 = vpop.permute.xlu0 %1148  ;;  %v1121_v29 = vsel %vm1117_vm3, %v1108_v26, 0.0 }
 0x32f   : > { %v1819_v31 = vpop.eup %1818  ;;  %v1161_v44 = vsel %vm1117_vm3, %v1149_v27, 0.0 }
 0x330   : > { %v847_v32 = vmul.f32 %v1819_v31, %v2166_v30  ;;  %1122 = vadd.xlane.f32.xlu1 %v1121_v29  ;;  %v1821_v41 = vpop.eup %1820  ;;  %v2282_v31 = vunpack.c.l.bf16 %v861_v23 }
 0x331   : > { %v1110_v35 = vpop.permute.xlu1 %1109  ;;  %v848_v50 = vmul.f32 %v1821_v41, %v2164_v28 }
 0x332   : > { %v863_v36 = vpack.c.bf16 %v847_v32, %v847_v32  ;;  %v1124_v40 = vsel %vm1117_vm3, %v1110_v35, 0.0  ;;  %v1153_v48 = vpop.permute.xlu0 %1152 }
 0x333   : > { %1125 = vadd.xlane.f32.xlu0 %v1124_v40  ;;  %v1167_v55 = vsel %vm1117_vm3, %v1153_v48, 0.0  ;;  %v864_v4 = vpack.c.bf16 %v848_v50, %v848_v50 }
 0x334   : > { %1657 = vmatmul.mubr.msk.bf16.vlgmr.msra.gmra.mrb[8].mxu1 %vm865_vm4, %v863_v36  ;;  %1162 = vadd.xlane.f32.xlu1 %v1161_v44 }
 0x335   : > { %1661 = vmatpush3.bf16.msra.mxu1 %v630_v6  ;;  %v1147_v30 = vpop.permute.xlu1 %1146  ;;  %1662 = vmatprep.mubr.msk.bf16.mxu1 %vm1976_vm1, %v1974_v42 }
 0x336   : > { %v1823_v49 = vpop.eup %1822  ;;  %1666 = vmatprep.subr.bf16.mxu1 %v1974_v42  ;;  %v1158_v63 = vsel %vm1117_vm3, %v1147_v30, 0.0 }
 0x337   : > { %v860_v54 = vmul.f32 %v1823_v49, %v2172_v34  ;;  %1119 = vadd.xlane.f32.xlu0 %v1118_v53  ;;  %v1825_v6 = vpop.eup %1824 }
 0x338   : > { %1168 = vadd.xlane.f32.xlu1 %v1167_v55  ;;  %v859_v28 = vmul.f32 %v1825_v6, %v2170_v33 }
 0x339   : > { %v953_v60 = vpack.c.bf16 %v860_v54, %v860_v54  ;;  %v1151_v62 = vpop.permute.xlu1 %1150 }
 0x33a   : > { %v1164_v34 = vsel %vm1117_vm3, %v1151_v62, 0.0  ;;  %v952_v0 = vpack.c.bf16 %v859_v28, %v859_v28 }
 0x33b   : > { %1675 = vmatmul.mubr.msk.bf16.vlgmr.msra.gmra.mrb[12].mxu0 %vm865_vm4, %v953_v60  ;;  %1159 = vadd.xlane.f32.xlu0 %v1158_v63 }
 0x33c   : > { %1663 = vmatmul.mubr.msk.bf16.vlgmr.msra.gmra.mrb[12].mxu1 %vm865_vm4, %v864_v4  ;;  %1686 = vmatprep.mubr.msk.bf16.mxu0 %vm1976_vm1, %v1974_v42 }
 0x33d   : > { %1667 = vmatpush3.bf16.msra.mxu1 %v631_v1  ;;  %1668 = vmatprep.mubr.msk.bf16.mxu1 %vm1976_vm1, %v1974_v42 }
 0x33e   : > { %1678 = vmatprep.subr.bf16.mxu1 %v1974_v42 }
 0x33f   : > { %1165 = vadd.xlane.f32.xlu0 %v1164_v34 }
 0x344   : > { %1669 = vmatmul.mubr.msk.bf16.vlgmr.msra.gmra.mrb[16].mxu1 %vm865_vm4, %v952_v0 }
 0x345   : > { %1680 = vmatprep.mubr.msk.bf16.mxu1 %vm1976_vm1, %v1974_v42 }
 0x363   : > { %v1058_v3 = vpop.xlane.xlu0 %1057 }
 0x364   : > { %v1066_v17 = vadd.f32 1e-09, %v1058_v3 }
 0x367   : > { %v1061_v58 = vpop.xlane.xlu0 %1060 }
 0x368   : > { %v1067_v20 = vadd.f32 1e-09, %v1061_v58 }
 0x36a   : > { %v1055_v7 = vpop.xlane.xlu1 %1054 }
 0x36b   : > { %v1079_v1 = vpop.xlane.xlu0 %1078  ;;  %v1065_v15 = vadd.f32 1e-09, %v1055_v7 }
 0x36c   : > { %v1089_v25 = vadd.f32 1e-09, %v1079_v1 }
 0x36e   : > { %v1064_v59 = vpop.xlane.xlu1 %1063 }
 0x36f   : > { %v1085_v9 = vpop.xlane.xlu0 %1084  ;;  %v1068_v24 = vadd.f32 1e-09, %v1064_v59 }
 0x370   : > { %v1091_v29 = vadd.f32 1e-09, %v1085_v9 }
 0x372   : > { %v1082_v8 = vpop.xlane.xlu1 %1081 }
 0x373   : > { %v1090_v50 = vadd.f32 1e-09, %v1082_v8 }
 0x376   : > { %v1088_v10 = vpop.xlane.xlu1 %1087 }
 0x377   : > { %v1092_v6 = vadd.f32 1e-09, %v1088_v10 }
 0x3b9   : > { %v1129_v11 = vpop.xlane.xlu1 %1128 }
 0x3ba   : > { %v1133_v22 = vadd.f32 1e-09, %v1129_v11 }
 0x3bd   : > { %v1123_v13 = vpop.xlane.xlu1 %1122 }
 0x3be   : > { %v1131_v16 = vadd.f32 1e-09, %v1123_v13 }
 0x3c0   : > { %v1126_v33 = vpop.xlane.xlu0 %1125 }
 0x3c1   : > { %v1132_v19 = vadd.f32 1e-09, %v1126_v33  ;;  %v1163_v21 = vpop.xlane.xlu1 %1162 }
 0x3c2   : > { %v1171_v44 = vadd.f32 1e-09, %v1163_v21 }
 0x3c4   : > { %v1120_v12 = vpop.xlane.xlu0 %1119 }
 0x3c5   : > { %v1130_v14 = vadd.f32 1e-09, %v1120_v12  ;;  %v1169_v35 = vpop.xlane.xlu1 %1168 }
 0x3c6   : > { %v1173_v53 = vadd.f32 1e-09, %v1169_v35 }
 0x3c7   : > { %1826 = vrcp.f32 %v1130_v14 }
 0x3c8   : > { %1828 = vrcp.f32 %v1065_v15  ;;  %v1160_v18 = vpop.xlane.xlu0 %1159 }
 0x3c9   : > { %1830 = vrcp.f32 %v1131_v16  ;;  %v1170_v36 = vadd.f32 1e-09, %v1160_v18 }
 0x3ca   : > { %1832 = vrcp.f32 %v1066_v17 }
 0x3cb   : > { %1834 = vrcp.f32 %v1132_v19 }
 0x3cc   : > { %1836 = vrcp.f32 %v1067_v20  ;;  %v1166_v26 = vpop.xlane.xlu0 %1165 }
 0x3cd   : > { %1838 = vrcp.f32 %v1133_v22  ;;  %v1172_v41 = vadd.f32 1e-09, %v1166_v26 }
 0x3ce   : > { %1840 = vrcp.f32 %v1068_v24 }
 0x3cf   : > { %1842 = vrcp.f32 %v1089_v25 }
 0x3d0   : > { %1844 = vrcp.f32 %v1091_v29 }
 0x3d1   : > { %v1827_v27 = vpop.eup %1826  ;;  %1846 = vrcp.f32 %v1170_v36 }
 0x3d2   : > { %v1829_v32 = vpop.eup %1828  ;;  %v1138_v48 = vmul.f32 %v1827_v27, %v2176_v37  ;;  %1848 = vrcp.f32 %v1172_v41 }
 0x3d3   : > { %v1831_v40 = vpop.eup %1830  ;;  %v1073_v60 = vmul.f32 %v1829_v32, %v2176_v37  ;;  %1850 = vrcp.f32 %v1171_v44 }
 0x3d4   : > { %v1833_v49 = vpop.eup %1832  ;;  %v1139_v63 = vmul.f32 %v1831_v40, %v2178_v38  ;;  %1852 = vrcp.f32 %v1173_v53 }
 0x3d5   : > { %v1074_v34 = vmul.f32 %v1833_v49, %v2178_v38  ;;  %v1182_v0 = vsel %vm1052_vm2, %v1073_v60, %v1138_v48  ;;  %v1835_v3 = vpop.eup %1834  ;;  %1854 = vrcp.f32 %v1090_v50 }
 0x3d6   : > { %v1837_v58 = vpop.eup %1836  ;;  %1856 = vrcp.f32 %v1092_v6  ;;  %v1140_v38 = vmul.f32 %v1835_v3, %v2187_v43 }
 0x3d7   : > { %v1183_v37 = vsel %vm1052_vm2, %v1074_v34, %v1139_v63  ;;  %v1839_v59 = vpop.eup %1838  ;;  %v1075_v16 = vmul.f32 %v1837_v58, %v2187_v43 }
 0x3d8   : > { %v1186_v8 = vpack.c.bf16 %v1183_v37, %v1182_v0  ;;  %v1841_v33 = vpop.eup %1840  ;;  %v1141_v17 = vmul.f32 %v1839_v59, %v2182_v39 }
 0x3d9   : > { %v1843_v15 = vpop.eup %1842  ;;  %v1076_v24 = vmul.f32 %v1841_v33, %v2182_v39  ;;  %v1184_v25 = vsel %vm1052_vm2, %v1075_v16, %v1140_v38 }
 0x3da   : > { %v1845_v20 = vpop.eup %1844 }
 0x3db   : > { %v1847_v23 = vpop.eup %1846  ;;  %v1185_v32 = vsel %vm1052_vm2, %v1076_v24, %v1141_v17 }
 0x3dc   : > { %v1849_v26 = vpop.eup %1848  ;;  %v1187_v36 = vpack.c.bf16 %v1185_v32, %v1184_v25  ;;  %v1178_v41 = vmul.f32 %v1847_v23, %v2202_v56 }
 0x3dd   : > { %v1851_v43 = vpop.eup %1850  ;;  %v1180_v44 = vmul.f32 %v1849_v26, %v2222_v2 }
 0x3de   : > { %v1853_v35 = vpop.eup %1852 }
 0x3df   : > { %v1855_v40 = vpop.eup %1854  ;;  %v1181_v60 = vmul.f32 %v1853_v35, %v2214_v61 }
 0x3e0   : > { %v1857_v48 = vpop.eup %1856  ;;  %v1098_v6 = vmul.f32 %v1855_v40, %v2194_v51 }
 0x407   : > { %v903_v30 = vpop.f32.mrb[8].mxu1 }
 0x408   : > { %v904_v54 = vadd.f32 %v903_v30, %v2282_v31  ;;  %v1658_v55 = vpop.f32.mrb[9].mxu1  ;;  %v1097_v30 = vmul.f32 %v1843_v15, %v2202_v56 }
 0x409   : > { %v906_v4 = vpop.f32.mrb[10].mxu1  ;;  %v1179_v55 = vmul.f32 %v1851_v43, %v2194_v51 }
 0x40a   : > { %v1194_v62 = vpack.c.bf16 %v904_v54, %v904_v54  ;;  %v1659_v28 = vpop.f32.mrb[11].mxu1  ;;  %v1099_v54 = vmul.f32 %v1845_v20, %v2222_v2 }
 0x40b   : > { %v1189_v34 = vsel %vm1052_vm2, %v1098_v6, %v1179_v55 }
 0x40c   : > { %v1202_v7 = vsel %vm1200_vm5, %v1194_v62, 0  ;;  %v1188_v62 = vsel %vm1052_vm2, %v1097_v30, %v1178_v41  ;;  %v1190_v28 = vsel %vm1052_vm2, %v1099_v54, %v1180_v44 }
 0x40d   : > { %1679 = vmatpush3.bf16.msra.mxu1 %v1202_v7  ;;  %v1192_v3 = vpack.c.bf16 %v1189_v34, %v1188_v62 }
 0x40e   : > { %v1034_v1 = vpop.f32.mrb[12].mxu0  ;;  %1690 = vmatprep.subr.bf16.mxu1 %v1974_v42 }
 0x40f   : > { %v946_v9 = vpop.f32.mrb[12].mxu1  ;;  %v1676_v10 = vpop.f32.mrb[13].mxu0  ;;  %v1035_v11 = vadd.f32 %v1034_v1, %v2282_v31 }
 0x410   : > { %v947_v12 = vadd.f32 %v946_v9, %v2282_v31  ;;  %v1664_v13 = vpop.f32.mrb[13].mxu1  ;;  %v1037_v14 = vpop.f32.mrb[14].mxu0  ;;  %1681 = vmatmul.mubr.msk.bf16.vlgmr.msra.gmra.mrb[20].mxu1 %vm1196_vm6, %v1186_v8 }
 0x411   : > { %v949_v18 = vpop.f32.mrb[14].mxu1  ;;  %v1677_v19 = vpop.f32.mrb[15].mxu0  ;;  %1692 = vmatprep.mubr.msk.bf16.mxu1 %vm1976_vm1, %v1974_v42  ;;  %v1297_v27 = vpack.c.bf16 %v1035_v11, %v1035_v11 }
 0x412   : > { %v1195_v21 = vpack.c.bf16 %v947_v12, %v947_v12  ;;  %v1665_v22 = vpop.f32.mrb[15].mxu1 }
 0x413   : > { %v1349_v49 = vsel %vm1200_vm5, %v1297_v27, 0 }
 0x414   : > { %v1249_v29 = vsel %vm1200_vm5, %v1195_v21, 0 }
 0x415   : > { %1685 = vmatpush3.bf16.msra.mxu0 %v1249_v29 }
 0x416   : > { %1696 = vmatprep.subr.bf16.mxu0 %v1974_v42 }
 0x417   : > { %v991_v39 = vpop.f32.mrb[16].mxu1 }
 0x418   : > { %v992_v50 = vadd.f32 %v991_v39, %v2282_v31  ;;  %v1670_v53 = vpop.f32.mrb[17].mxu1  ;;  %1687 = vmatmul.mubr.msk.bf16.vlgmr.msra.gmra.mrb[16].mxu0 %vm1196_vm6, %v1187_v36  ;;  %v1100_v31 = vmul.f32 %v1857_v48, %v2214_v61 }
 0x419   : > { %v994_v63 = vpop.f32.mrb[18].mxu1  ;;  %1697 = vmatpush3.bf16.msra.mxu0 %v1349_v49  ;;  %1698 = vmatprep.mubr.msk.bf16.mxu0 %vm1976_vm1, %v1974_v42  ;;  %v343_v42 = vsub.s32 3, %v2139_v45 }
 0x41a   : > { %v1296_v4 = vpack.c.bf16 %v992_v50, %v992_v50  ;;  %v1671_v56 = vpop.f32.mrb[19].mxu1  ;;  %v1191_v0 = vsel %vm1052_vm2, %v1100_v31, %v1181_v60 }
 0x41b   : > { %v1193_v7 = vpack.c.bf16 %v1191_v0, %v1190_v28  ;;  %v344_v51 = vrot.slane %v2145_v47, %v343_v42 }
 0x41c   : > { %v1302_v2 = vsel %vm1200_vm5, %v1296_v4, 0 }
 0x41d   : > { %1691 = vmatpush3.bf16.msra.mxu1 %v1302_v2  ;;  %v611_v61 = vadd.f32 %v2191_v46, %v344_v51  ;;  %v621_v58 = vadd.f32 %v2206_v57, %v344_v51  ;;  %v615_v37 = vadd.f32 %v2198_v52, %v344_v51  ;;  %v625_v59 = vadd.f32 %v2228_v5, %v344_v51 }
 0x41f   : > { %v1595_v1 = vmul.f32 -1.442695, %v611_v61  ;;  %v1597_v8 = vmul.f32 -1.442695, %v621_v58  ;;  %v1596_v38 = vmul.f32 -1.442695, %v615_v37 }
 0x420   : > { %1693 = vmatmul.mubr.msk.bf16.vlgmr.msra.gmra.mrb[24].mxu1 %vm1196_vm6, %v1192_v3  ;;  %1699 = vmatmul.mubr.msk.bf16.vlgmr.msra.gmra.mrb[20].mxu0 %vm1196_vm6, %v1193_v7  ;;  %v1598_v9 = vmul.f32 -1.442695, %v625_v59 }
 0x421   : > { %1858 = vpow2.f32 %v1595_v1 }
 0x422   : > { %1860 = vpow2.f32 %v1597_v8 }
 0x423   : > { %1862 = vpow2.f32 %v1596_v38 }
 0x424   : > { %1864 = vpow2.f32 %v1598_v9 }
 0x42b   : > { %v1859_v33 = vpop.eup %1858 }
 0x42c   : > { %v1861_v11 = vpop.eup %1860  ;;  %v1408_v12 = vadd.f32 1.0, %v1859_v33 }
 0x42d   : > { %v1863_v57 = vpop.eup %1862  ;;  %v1410_v5 = vadd.f32 1.0, %v1861_v11 }
 0x42e   : > { %v1865_v52 = vpop.eup %1864  ;;  %v1409_v13 = vadd.f32 1.0, %v1863_v57  ;;  %1866 = vrcp.f32 %v1408_v12 }
 0x42f   : > { %v1411_v14 = vadd.f32 1.0, %v1865_v52  ;;  %1868 = vrcp.f32 %v1410_v5 }
 0x430   : > { %1870 = vrcp.f32 %v1409_v13 }
 0x431   : > { %1872 = vrcp.f32 %v1411_v14 }
 0x438   : > { %v1867_v35 = vpop.eup %1866 }
 0x439   : > { %v1869_v30 = vpop.eup %1868 }
 0x43a   : > { %v1871_v49 = vpop.eup %1870 }
 0x43b   : > { %v1873_v60 = vpop.eup %1872 }
 0x4e3   : > { %v1238_v10 = vpop.f32.mrb[20].mxu1 }
 0x4e4   : > { %v1682_v45 = vpop.f32.mrb[21].mxu1  ;;  %v1292_v21 = vmul.f32 0.5, %v1238_v10 }
 0x4e5   : > { %v1241_v47 = vpop.f32.mrb[22].mxu1 }
 0x4e6   : > { %v1683_v46 = vpop.f32.mrb[23].mxu1  ;;  %v1293_v27 = vmul.f32 0.5, %v1241_v47 }
 0x4eb   : > { %v1285_v15 = vpop.f32.mrb[16].mxu0 }
 0x4ec   : > { %v1688_v16 = vpop.f32.mrb[17].mxu0  ;;  %v1294_v22 = vmul.f32 0.5, %v1285_v15 }
 0x4ed   : > { %v1288_v17 = vpop.f32.mrb[18].mxu0 }
 0x4ee   : > { %v1689_v18 = vpop.f32.mrb[19].mxu0  ;;  %v1295_v29 = vmul.f32 0.5, %v1288_v17 }
 0x4f3   : > { %v1338_v19 = vpop.f32.mrb[24].mxu1  ;;  %v1385_v20 = vpop.f32.mrb[20].mxu0 }
 0x4f4   : > { %v1392_v23 = vmul.f32 0.5, %v1338_v19  ;;  %v1394_v24 = vmul.f32 0.5, %v1385_v20  ;;  %v1694_v25 = vpop.f32.mrb[25].mxu1  ;;  %v1700_v26 = vpop.f32.mrb[21].mxu0 }
 0x4f5   : > { %v1341_v43 = vpop.f32.mrb[26].mxu1  ;;  %v1388_v32 = vpop.f32.mrb[22].mxu0 }
 0x4f6   : > { %v1420_v36 = vsub.f32 %v1292_v21, %v1392_v23  ;;  %v1422_v40 = vsub.f32 %v1294_v22, %v1394_v24  ;;  %v1393_v41 = vmul.f32 0.5, %v1341_v43  ;;  %v1395_v44 = vmul.f32 0.5, %v1388_v32  ;;  %v1695_v39 = vpop.f32.mrb[27].mxu1  ;;  %v1701_v48 = vpop.f32.mrb[23].mxu0 }
 0x4f8   : > { %v1424_v50 = vmul.f32 %v1867_v35, %v1420_v36  ;;  %v1426_v53 = vmul.f32 %v1869_v30, %v1422_v40  ;;  %v1421_v54 = vsub.f32 %v1293_v27, %v1393_v41  ;;  %v1423_v55 = vsub.f32 %v1295_v29, %v1395_v44 }
 0x4fa   : > { %v1428_v63 = vadd.f32 %v1424_v50, %v1392_v23  ;;  %v1430_v4 = vadd.f32 %v1426_v53, %v1394_v24  ;;  %v1425_v56 = vmul.f32 %v1871_v49, %v1421_v54  ;;  %v1427_v6 = vmul.f32 %v1873_v60, %v1423_v55 }
 0x4fc   : > { %1432 = vst [vmem:[%s276_s11] sm:$0xff] %v1428_v63  ;;  %1434 = vst [vmem:[%s276_s11 + $0x10] sm:$0xff] %v1430_v4  ;;  %v1429_v31 = vadd.f32 %v1425_v56, %v1393_v41  ;;  %v1431_v62 = vadd.f32 %v1427_v6, %v1395_v44 }
 0x4fe   : > { %1433 = vst [vmem:[%s276_s11 + $0x8] sm:$0xff] %v1429_v31  ;;  %1435 = vst [vmem:[%s276_s11 + $0x18] sm:$0xff] %v1431_v62 }
 0x4ff   : > { %1915 = shalt.err (!%p1912_p7)
}
 0x500   : > { %s1916_s12 = scalar_lea.hbm %s2341_s17, 512  ;;  %s1920_s10 = scalar_lea.hbm %s2392_s6, 1024 }
 0x501   : > { %p1917_p8 = scmp.ne.s32.totalorder %s2341_s17, %s1916_s12  ;;  %p1921_p1 = scmp.lt.u32.totalorder %s2341_s17, %s2392_s6 }
 0x502   : > { %p1922_p0 = scmp.lt.u32.totalorder %s1920_s10, %s1916_s12  ;;  %p1924_p6 = scmp.lt.u32.totalorder %s1916_s12, %s2341_s17 }
 0x503   : > { %p1918_p11 = pnand %p1917_p8, %p2403_p9 }
 0x504   : > { %p1923_p5 = por %p1922_p0, %p1921_p1 }
 0x505   : > { %p1919_p13 = pneg %p1918_p11 }
 0x506   : > { %p1925_p10 = por %p1924_p6, %p1923_p5 }
 0x508   : > { %p1926_p12 = pnand %p1925_p10, %p1919_p13 }
 0x50a   : > { %1929 = shalt.err (!%p1926_p12)
}
 0x50b   : > { %s1978_s14 = smov 128   ;;  %s1979_s15 = smov 8  }
 0x50c   : > { %1706 = dma.vmem_to_hbm [thread:$0]  (%p2403_p9), %s2336_s13, 512, %s2341_s17, %s2345_s25, %s1978_s14, %s1978_s14, %s1979_s15  }
 0x50d PF: > { %p1718_p2 = scmp.ge.s32.totalorder %s1968_s24, 2  ;;  %s1466_s16 = sand.u32 1, %s1956_s21  }
 0x50e   : > { %p2404_p3 = scmp.ne.s32.totalorder %s2397_s8, 0  ;;  %s1467_s18 = scalar_lea.sflag [#allocation4], %s1466_s16 }
 0x510   : > { %p1713_p4 = pnand %p1718_p2, %p2404_p3 }
 0x512   : > { %1951 = dma.done.wait (!%p1713_p4), %s1467_s18, 512  }
 0x513   : > { %1953 = vsyncadd (!%p1713_p4), %s1467_s18, 4294966784  ;;  %p17_p7 = scmp.ge.s32.totalorder %s2040_s27, 4   ;;  %s2405_s21 = smov %s1960_s22 }
 0x514   : > { %s2406_s22 = smov %s1964_s23  ;;  %s2407_s23 = smov %s2051_s30 }
 0x515   : > { %s2408_s24 = smov %s2040_s27  ;;  %19 = sbr.rel (!%p17_p7) target bundleno = 4 (0x4), region = 87 }
 0x51c   :  { %1472 = vsyncpa [#allocation3], 1 }
 0x51d   :  { %1474 = vsyncpa [#allocation3 + $0x1], 1 }
 0x51e   :  { %1475 = vsyncpa [#allocation4], 1 }
 0x51f   :  { %1477 = vsyncpa [#allocation4 + $0x1], 1 }

</bundles_post_ra>
